<compile_context>
chip_gen: v5e
topology: v5e:2x2
jax: 0.10.0
libtpu: 0.0.40
codegen_flags: <defaults>
</compile_context>

<pallas_src>
import math

import jax
import jax.numpy as jnp
from jax.experimental import pallas as pl
from jax.experimental.pallas import tpu as pltpu


def _round_up(x: int, m: int) -> int:
    return (x + m - 1) // m * m


# ---------------------------------------------------------------------------
# Fused kernel: (TM, 784) f32 -> bf16 @ (784, 128) + b1 -> ReLU -> @ (128, 128) + b2
# Matmuls on the MXU with f32 accumulation; cast / bias / ReLU on the VPU.
# ---------------------------------------------------------------------------
def _mlp_kernel(x_ref, w1_ref, b1_ref, w2_ref, b2_ref, o_ref):
    x = x_ref[...].astype(w1_ref.dtype)                     # in-kernel f32 -> bf16 cast
    h = jnp.dot(x, w1_ref[...], preferred_element_type=jnp.float32)
    h = jnp.maximum(h + b1_ref[...], 0.0)                   # bias + ReLU in f32
    y = jnp.dot(h.astype(w2_ref.dtype), w2_ref[...],
                preferred_element_type=jnp.float32)
    o_ref[...] = (y + b2_ref[...]).astype(o_ref.dtype)      # bf16 lane-dense writeback


# ---------------------------------------------------------------------------
# One-time parameter prep (hoisted off the per-call critical path):
#   transpose PyTorch (out, in) weights, cast to bf16, zero-pad H/C to 128 lanes.
# Zero padding is inert: padded w1 columns give ReLU(0 + 0) = 0, and the padded
# w2 rows they multiply are also zero.
# ---------------------------------------------------------------------------
def prepare_params(params, compute_dtype=jnp.bfloat16):
    H, K = params["w1"].shape                               # (100, 784)
    C, Hw = params["w2"].shape                              # (10, 100)
    assert H == Hw
    H_pad = _round_up(H, 128)                               # 100 -> 128
    C_pad = _round_up(C, 128)                               # 10  -> 128
    w1p = jnp.zeros((K, H_pad), compute_dtype).at[:, :H].set(
        params["w1"].T.astype(compute_dtype))
    b1p = jnp.zeros((1, H_pad), jnp.float32).at[:, :H].set(params["b1"].reshape(1, H))
    w2p = jnp.zeros((H_pad, C_pad), compute_dtype).at[:H, :C].set(
        params["w2"].T.astype(compute_dtype))
    b2p = jnp.zeros((1, C_pad), jnp.float32).at[:, :C].set(params["b2"].reshape(1, C))
    return dict(w1=w1p, b1=b1p, w2=w2p, b2=b2p, in_features=K, out_features=C)


def _choose_tm(batch: int, tm_max: int) -> int:
    """Row tile: multiple of 16 (bf16 sublanes), as large as allowed, and when more
    than one tile is needed the tile count is made even (balances v7x's 2 TCs)."""
    tm_max = max(16, _round_up(tm_max, 16))
    m16 = _round_up(batch, 16)
    if m16 <= tm_max:
        return m16                                          # single tile
    n = -(-m16 // tm_max)
    if n % 2:
        n += 1                                              # even grid -> 2-TC balance
    return _round_up(-(-m16 // n), 16)


# ---------------------------------------------------------------------------
# Forward wrapper: flatten, tile over rows, launch fused kernel, slice result.
# ---------------------------------------------------------------------------
def simple_mlp_forward(x, prepped, *, tm_max=1024, out_dtype=jnp.float32):
    B = x.shape[0]
    x2 = x.reshape(B, -1)                                   # nn.Flatten (stays f32)
    K = x2.shape[1]
    w1, b1, w2, b2 = prepped["w1"], prepped["b1"], prepped["w2"], prepped["b2"]
    C = prepped["out_features"]
    assert K == prepped["in_features"] == w1.shape[0]
    H_pad, C_pad = w1.shape[1], w2.shape[1]

    tm = _choose_tm(B, tm_max)
    grid = pl.cdiv(B, tm)
    M_pad = grid * tm                                       # output slab rows (no partial
                                                            # output blocks -> unmasked vst)

    cost = pl.CostEstimate(
        flops=2 * M_pad * (K * H_pad + H_pad * C_pad),
        transcendentals=0,
        bytes_accessed=(B * K * 4                           # x read directly in f32
                        + w1.size * 2 + w2.size * 2         # bf16 weights (resident)
                        + b1.size * 4 + b2.size * 4
                        + M_pad * C_pad * 2),               # bf16 output slab
    )

    out = pl.pallas_call(
        _mlp_kernel,
        out_shape=jax.ShapeDtypeStruct((M_pad, C_pad), jnp.bfloat16),
        grid=(grid,),
        in_specs=[
            # (tm, 784): last dim equals the full array dim, so no K padding needed.
            # Rows >= B in the final partial block are boundary garbage, sliced off below.
            pl.BlockSpec((tm, K), lambda i: (i, 0)),
            pl.BlockSpec((K, H_pad), lambda i: (0, 0)),     # W1 (resident)
            pl.BlockSpec((1, H_pad), lambda i: (0, 0)),     # b1 (resident)
            pl.BlockSpec((H_pad, C_pad), lambda i: (0, 0)), # W2 (resident)
            pl.BlockSpec((1, C_pad), lambda i: (0, 0)),     # b2 (resident)
        ],
        out_specs=pl.BlockSpec((tm, C_pad), lambda i: (i, 0)),
        compiler_params=pltpu.CompilerParams(
            dimension_semantics=("parallel",),  # independent row tiles -> megacore-shardable
        ),
        cost_estimate=cost,
    )(x2, w1, b1, w2, b2)

    return out[:B, :C].astype(out_dtype)


# ---------------------------------------------------------------------------
# Deterministic parameter init matching the module's init law:
#   w ~ U(-sf, sf), b ~ U(-sf, sf), sf = 1/sqrt(in_features), weight shape (out, in).
# ---------------------------------------------------------------------------
def init_params(key):
    k1, k2, k3, k4 = jax.random.split(key, 4)

    def lin(kw, kb, out_f, in_f):
        sf = 1.0 / math.sqrt(in_f)
        w = jax.random.uniform(kw, (out_f, in_f), jnp.float32, -sf, sf)
        b = jax.random.uniform(kb, (out_f,), jnp.float32, -sf, sf)
        return w, b

    w1, b1 = lin(k1, k2, 100, 28 * 28)
    w2, b2 = lin(k3, k4, 10, 100)
    return dict(w1=w1, b1=b1, w2=w2, b2=b2)


# ---------------------------------------------------------------------------
# Pure-JAX f32 reference (mirrors the PyTorch forward: no softmax).
# ---------------------------------------------------------------------------
def simple_mlp_ref(x, params):
    x2 = x.reshape(x.shape[0], -1).astype(jnp.float32)
    h = jnp.maximum(x2 @ params["w1"].T + params["b1"], 0.0)
    return h @ params["w2"].T + params["b2"]


if __name__ == "__main__":
    key = jax.random.PRNGKey(0)
    kx, kx2, kp = jax.random.split(key, 3)
    params = init_params(kp)
    prepped = prepare_params(params)                        # one-time weight prep

    # Case 1: small batch consistent with the module's expected input (B, 1, 28, 28).
    x = jax.random.normal(kx, (2, 1, 28, 28), jnp.float32)
    out = jax.block_until_ready(simple_mlp_forward(x, prepped))
    ref = simple_mlp_ref(x, params)
    assert out.shape == (2, 10), out.shape
    # bf16 MXU operands + bf16 output store, f32 accumulation -> loose tolerance vs f32 ref.
    assert jnp.allclose(out, ref, atol=3e-2, rtol=3e-2), float(jnp.max(jnp.abs(out - ref)))

    # Case 2: batch that is not a tile multiple, with a small tm_max to exercise the
    # multi-tile grid (even number of tiles) and the partial-input-block path.
    xb = jax.random.normal(kx2, (300, 1, 28, 28), jnp.float32)
    outb = jax.block_until_ready(simple_mlp_forward(xb, prepped, tm_max=128))
    refb = simple_mlp_ref(xb, params)
    assert outb.shape == (300, 10), outb.shape
    assert jnp.allclose(outb, refb, atol=3e-2, rtol=3e-2), float(jnp.max(jnp.abs(outb - refb)))

    print("KERNEL_OK")
</pallas_src>

<mosaic_0001>
module attributes {stable_mosaic.version = 11 : i64} {
  func.func @_mlp_kernel(%arg0: i32, %arg1: memref<16x784xf32, #tpu.memory_space<vmem>>, %arg2: memref<784x128xbf16, #tpu.memory_space<vmem>>, %arg3: memref<1x128xf32, #tpu.memory_space<vmem>>, %arg4: memref<128x128xbf16, #tpu.memory_space<vmem>>, %arg5: memref<1x128xf32, #tpu.memory_space<vmem>>, %arg6: memref<16x128xbf16, #tpu.memory_space<vmem>>) attributes {dimension_semantics = [#tpu.dimension_semantics<parallel>], iteration_bounds = array<i64: 1>, scalar_prefetch = 0 : i64, scratch_operands = 0 : i64, tpu.core_type = #tpu.core_type<tc>, window_params = [{transform_indices = @transform_0, window_bounds = array<i64: 16, 784>}, {pipeline_mode = #tpu.pipeline_mode<synchronous>, transform_indices = @transform_1, window_bounds = array<i64: 784, 128>}, {pipeline_mode = #tpu.pipeline_mode<synchronous>, transform_indices = @transform_2, window_bounds = array<i64: 1, 128>}, {pipeline_mode = #tpu.pipeline_mode<synchronous>, transform_indices = @transform_3, window_bounds = array<i64: 128, 128>}, {pipeline_mode = #tpu.pipeline_mode<synchronous>, transform_indices = @transform_4, window_bounds = array<i64: 1, 128>}, {transform_indices = @transform_5, window_bounds = array<i64: 16, 128>}]} {
    %c0 = arith.constant 0 : index
    %c0_0 = arith.constant 0 : index
    %0 = vector.load %arg1[%c0, %c0_0] : memref<16x784xf32, #tpu.memory_space<vmem>>, vector<16x784xf32>
    %1 = arith.truncf %0 : vector<16x784xf32> to vector<16x784xbf16>
    %c0_1 = arith.constant 0 : index
    %c0_2 = arith.constant 0 : index
    %2 = vector.load %arg2[%c0_1, %c0_2] : memref<784x128xbf16, #tpu.memory_space<vmem>>, vector<784x128xbf16>
    %cst = arith.constant dense<0.000000e+00> : vector<16x128xf32>
    %3 = tpu.matmul %1, %2, %cst {dimension_numbers = #tpu.dot_dimension_numbers<[1], [0], [0], [1], [0, 0, 1, 1], [], []>} : vector<16x784xbf16>, vector<784x128xbf16>, vector<16x128xf32> -> vector<16x128xf32>
    %c0_3 = arith.constant 0 : index
    %c0_4 = arith.constant 0 : index
    %4 = vector.load %arg3[%c0_3, %c0_4] : memref<1x128xf32, #tpu.memory_space<vmem>>, vector<1x128xf32>
    %5 = vector.broadcast %4 : vector<1x128xf32> to vector<16x128xf32>
    %6 = arith.addf %3, %5 : vector<16x128xf32>
    %cst_5 = arith.constant 0.000000e+00 : f32
    %7 = vector.broadcast %cst_5 : f32 to vector<16x128xf32>
    %8 = arith.maximumf %6, %7 : vector<16x128xf32>
    %9 = arith.truncf %8 : vector<16x128xf32> to vector<16x128xbf16>
    %c0_6 = arith.constant 0 : index
    %c0_7 = arith.constant 0 : index
    %10 = vector.load %arg4[%c0_6, %c0_7] : memref<128x128xbf16, #tpu.memory_space<vmem>>, vector<128x128xbf16>
    %cst_8 = arith.constant dense<0.000000e+00> : vector<16x128xf32>
    %11 = tpu.matmul %9, %10, %cst_8 {dimension_numbers = #tpu.dot_dimension_numbers<[1], [0], [0], [1], [0, 0, 1, 1], [], []>} : vector<16x128xbf16>, vector<128x128xbf16>, vector<16x128xf32> -> vector<16x128xf32>
    %c0_9 = arith.constant 0 : index
    %c0_10 = arith.constant 0 : index
    %12 = vector.load %arg5[%c0_9, %c0_10] : memref<1x128xf32, #tpu.memory_space<vmem>>, vector<1x128xf32>
    %13 = vector.broadcast %12 : vector<1x128xf32> to vector<16x128xf32>
    %14 = arith.addf %11, %13 : vector<16x128xf32>
    %15 = arith.truncf %14 : vector<16x128xf32> to vector<16x128xbf16>
    %c0_11 = arith.constant 0 : index
    %c0_12 = arith.constant 0 : index
    %16 = vector.load %arg6[%c0_11, %c0_12] : memref<16x128xbf16, #tpu.memory_space<vmem>>, vector<16x128xbf16>
    tpu.vector_store %arg6[%c0_11, %c0_12], %15 {strides = array<i32>} : memref<16x128xbf16, #tpu.memory_space<vmem>>, vector<16x128xbf16>,
    return
  }
  func.func @transform_0(%arg0: i32) -> (i32, i32) {
    %c0_i32 = arith.constant 0 : i32
    %c0_i32_0 = arith.constant 0 : i32
    return %arg0, %c0_i32 : i32, i32
  }
  func.func @transform_1(%arg0: i32) -> (i32, i32) {
    %c0_i32 = arith.constant 0 : i32
    %c0_i32_0 = arith.constant 0 : i32
    %c0_i32_1 = arith.constant 0 : i32
    return %c0_i32, %c0_i32_0 : i32, i32
  }
  func.func @transform_2(%arg0: i32) -> (i32, i32) {
    %c0_i32 = arith.constant 0 : i32
    %c0_i32_0 = arith.constant 0 : i32
    %c0_i32_1 = arith.constant 0 : i32
    return %c0_i32, %c0_i32_0 : i32, i32
  }
  func.func @transform_3(%arg0: i32) -> (i32, i32) {
    %c0_i32 = arith.constant 0 : i32
    %c0_i32_0 = arith.constant 0 : i32
    %c0_i32_1 = arith.constant 0 : i32
    return %c0_i32, %c0_i32_0 : i32, i32
  }
  func.func @transform_4(%arg0: i32) -> (i32, i32) {
    %c0_i32 = arith.constant 0 : i32
    %c0_i32_0 = arith.constant 0 : i32
    %c0_i32_1 = arith.constant 0 : i32
    return %c0_i32, %c0_i32_0 : i32, i32
  }
  func.func @transform_5(%arg0: i32) -> (i32, i32) {
    %c0_i32 = arith.constant 0 : i32
    %c0_i32_0 = arith.constant 0 : i32
    return %arg0, %c0_i32 : i32, i32
  }
}

</mosaic_0001>

<bundles_post_ra>
// kernel: tpu_custom_call.1
= control target key start
LH: loop header
LB: loop body
LE: loop exit
PB: predicated region body
PF: predicated region fallthrough
CT: control target
= control target key end

     0   :  { %10 = vsyncpa [#allocation3], 0  ;;  %s1234_s0 = inlined_call_operand.hbm [shape: f32[2,784], index: 0, kind: input, shape index: {}]   ;;  %s1235_s1 = inlined_call_operand.hbm [shape: bf16[784,128], index: 1, kind: input, shape index: {}]   ;;  %s1236_s2 = inlined_call_operand.vmem [shape: f32[1,128], index: 2, kind: input, shape index: {}]   ;;  %s1237_s3 = inlined_call_operand.hbm [shape: bf16[128,128], index: 3, kind: input, shape index: {}]   ;;  %s1238_s4 = inlined_call_operand.vmem [shape: f32[1,128], index: 4, kind: input, shape index: {}]   ;;  %s1239_s5 = inlined_call_operand.hbm [shape: bf16[16,128], index: 5, kind: output, shape index: {}]  }
   0x1   :  { %11 = vsyncpa [#allocation6], 0 }
   0x2   :  { %12 = vsyncpa [#allocation4], 0  ;;  %s30_s20 = sshll.u32 %s1235_s1, 4  ;;  %s31_s20 = int_to_ptr.hbm [resolvable:$true] %s30_s20 }
   0x3   :  { %16 = vsyncadd [#allocation3], 1568  ;;  %s1169_s21 = smov [#allocation5]   ;;  %s17_s25 = sshll.u32 %s1234_s0, 4  ;;  %s18_s25 = int_to_ptr.hbm [resolvable:$true] %s17_s25 }
   0x4   :  { %s32_s22 = sshll.u32 %s1169_s21, 4  ;;  %s1170_s26 = smov 64   ;;  %s33_s22 = int_to_ptr.vmem [resolvable:$true] %s32_s22 }
   0x5   :  { %s1171_s27 = smov 4   ;;  %s1172_s28 = smov [#allocation2]  }
   0x6   :  { %38 = dma.hbm_to_vmem [thread:$0]  %s31_s20, 6272, %s33_s22, [#allocation6], %s1170_s26, %s1170_s26, %s1171_s27  }
   0x7   :  { %s19_s29 = sshll.u32 %s1172_s28, 4  ;;  %s1173_s1 = smov 224   ;;  %s20_s29 = int_to_ptr.vmem [resolvable:$true] %s19_s29 }
   0x8   :  { %s1174_s30 = smov 14   ;;  %s45_s8 = sshll.u32 %s1237_s3, 4  ;;  %s46_s8 = int_to_ptr.hbm [resolvable:$true] %s45_s8 }
   0x9   :  { %25 = dma.hbm_to_vmem [thread:$0]  %s18_s25, 224, %s20_s29, [#allocation3], %s1173_s1, %s1173_s1, %s1174_s30  }
   0xa   :  { %s1175_s9 = smov [#allocation7]  }
   0xb   :  { %s47_s0 = sshll.u32 %s1175_s9, 4  ;;  %s48_s0 = int_to_ptr.vmem [resolvable:$true] %s47_s0 }
   0xc   :  { %53 = dma.hbm_to_vmem [thread:$0]  %s46_s8, 1024, %s48_s0, [#allocation6], %s1170_s26, %s1170_s26, %s1171_s27  }
   0xd   :  { %1163 = dma.done.wait [#allocation3], 1792  }
   0xe   :  { %1164 = vsyncadd [#allocation3], 4294965504 }
   0xf   :  { %1165 = dma.done.wait [#allocation6], 7296  }
  0x10   :  { %1166 = vsyncadd [#allocation6], 4294960000  ;;  %v1002_v0 = vld [vmem:[#allocation5 + $0x38] sm:$0xff]  ;;  %v1001_v4 = vld [vmem:[#allocation5 + $0x30] sm:$0xff]  ;;  %vm555_vm0 = vcmask 130048   ;;  %s1176_s12 = smov [#allocation8]  }
  0x11   :  { %v1010_v1 = vld [vmem:[#allocation5 + $0x78] sm:$0xff]  ;;  %559 = vmatpush.bf16.msra.mxu0 %v1002_v0  ;;  %v1009_v5 = vld [vmem:[#allocation5 + $0x70] sm:$0xff]  ;;  %v1000_v8 = vld [vmem:[#allocation5 + $0x28] sm:$0xff]  ;;  %s750_s13 = sshll.u32 %s1176_s12, 4  ;;  %s752_s16 = sshll.u32 %s1239_s5, 4  ;;  %s751_s13 = int_to_ptr.vmem [resolvable:$true] %s750_s13  ;;  %s753_s16 = int_to_ptr.hbm [resolvable:$true] %s752_s16 }
  0x12   :  { %v1018_v2 = vld [vmem:[#allocation5 + $0xb8] sm:$0xff]  ;;  %573 = vmatpush.bf16.msra.mxu1 %v1010_v1  ;;  %v1017_v6 = vld [vmem:[#allocation5 + $0xb0] sm:$0xff]  ;;  %v1008_v9 = vld [vmem:[#allocation5 + $0x68] sm:$0xff] }
  0x13   :  { %v1026_v3 = vld [vmem:[#allocation5 + $0xf8] sm:$0xff]  ;;  %587 = vmatpush.bf16.msra.mxu2 %v1018_v2  ;;  %v1025_v7 = vld [vmem:[#allocation5 + $0xf0] sm:$0xff]  ;;  %v1016_v10 = vld [vmem:[#allocation5 + $0xa8] sm:$0xff] }
  0x14   :  { %601 = vmatpush.bf16.msra.mxu3 %v1026_v3  ;;  %v1024_v11 = vld [vmem:[#allocation5 + $0xe8] sm:$0xff]  ;;  %v999_v12 = vld [vmem:[#allocation5 + $0x20] sm:$0xff]  ;;  %v69_v16 = vld [vmem:[#allocation2] sm:$0xff] }
  0x15   :  { %560 = vmatpush.bf16.msra.mxu0 %v1001_v4  ;;  %v1007_v13 = vld [vmem:[#allocation5 + $0x60] sm:$0xff]  ;;  %v73_v18 = vld [vmem:[#allocation2 + $0x1c] sm:$0xff]  ;;  %101 = vst [vmem:[#allocation1] ss:$4 sm:$0xff] %v69_v16  ;;  %v998_v20 = vld [vmem:[#allocation5 + $0x18] sm:$0xff] }
  0x16   :  { %574 = vmatpush.bf16.msra.mxu1 %v1009_v5  ;;  %v1015_v14 = vld [vmem:[#allocation5 + $0xa0] sm:$0xff]  ;;  %v1006_v21 = vld [vmem:[#allocation5 + $0x58] sm:$0xff]  ;;  %105 = vst [vmem:[#allocation1 + $0x2] ss:$4 sm:$0xff] %v73_v18  ;;  %v997_v25 = vld [vmem:[#allocation5 + $0x10] sm:$0xff] }
  0x17   :  { %588 = vmatpush.bf16.msra.mxu2 %v1017_v6  ;;  %v1023_v15 = vld [vmem:[#allocation5 + $0xe0] sm:$0xff]  ;;  %v1014_v22 = vld [vmem:[#allocation5 + $0x98] sm:$0xff]  ;;  %v1005_v26 = vld [vmem:[#allocation5 + $0x50] sm:$0xff] }
  0x18   :  { %602 = vmatpush.bf16.msra.mxu3 %v1025_v7  ;;  %v71_v17 = vld [vmem:[#allocation2 + $0xe] sm:$0xff]  ;;  %v70_v24 = vld [vmem:[#allocation2 + $0x8] sm:$0x3f]  ;;  %v72_v27 = vld [vmem:[#allocation2 + $0x16] sm:$0x3f] }
  0x19   :  { %561 = vmatpush.bf16.msra.mxu0 %v1000_v8  ;;  %v75_v19 = vld [vmem:[#allocation2 + $0x2a] sm:$0xff]  ;;  %103 = vst [vmem:[#allocation1 + $0x1] ss:$4 sm:$0xff] %v71_v17  ;;  %v1013_v28 = vld [vmem:[#allocation5 + $0x90] sm:$0xff]  ;;  %v996_v31 = vld [vmem:[#allocation5 + $0x8] sm:$0xff] }
  0x1a   :  { %575 = vmatpush.bf16.msra.mxu1 %v1008_v9  ;;  %v1022_v23 = vld [vmem:[#allocation5 + $0xd8] sm:$0xff]  ;;  %107 = vst [vmem:[#allocation1 + $0x3] ss:$4 sm:$0xff] %v75_v19  ;;  %v1021_v29 = vld [vmem:[#allocation5 + $0xd0] sm:$0xff]  ;;  %v1004_v32 = vld [vmem:[#allocation5 + $0x48] sm:$0xff] }
  0x1b   :  { %589 = vmatpush.bf16.msra.mxu2 %v1016_v10  ;;  %v74_v30 = vld [vmem:[#allocation2 + $0x24] sm:$0x3f]  ;;  %109 = vst [vmem:[#allocation1 + $0x20] ss:$4 sm:$0xff] %v70_v24  ;;  %v1012_v33 = vld [vmem:[#allocation5 + $0x88] sm:$0xff]  ;;  %v995_v43 = vld [vmem:[#allocation5] sm:$0xff] }
  0x1c   :  { %603 = vmatpush.bf16.msra.mxu3 %v1024_v11  ;;  %v1020_v34 = vld [vmem:[#allocation5 + $0xc8] sm:$0xff]  ;;  %111 = vst [vmem:[#allocation1 + $0x21] ss:$4 sm:$0xff] %v72_v27  ;;  %v79_v36 = vld [vmem:[#allocation2 + $0x46] sm:$0xff]  ;;  %v1003_v44 = vld [vmem:[#allocation5 + $0x40] sm:$0xff] }
  0x1d   :  { %562 = vmatpush.bf16.msra.mxu0 %v999_v12  ;;  %v77_v35 = vld [vmem:[#allocation2 + $0x38] sm:$0xff]  ;;  %113 = vst [vmem:[#allocation1 + $0x22] ss:$4 sm:$0xff] %v74_v30  ;;  %v83_v42 = vld [vmem:[#allocation2 + $0x62] sm:$0xff]  ;;  %v76_v45 = vld [vmem:[#allocation2 + $0x32] sm:$0x3f] }
  0x1e   :  { %576 = vmatpush.bf16.msra.mxu1 %v1007_v13  ;;  %v81_v37 = vld [vmem:[#allocation2 + $0x54] sm:$0xff]  ;;  %v1034_v46 = vld [vmem:[#allocation5 + $0x138] sm:$0xff]  ;;  %115 = vst [vmem:[#allocation1 + $0x23] ss:$4 sm:$0xff] %v76_v45  ;;  %v1033_v51 = vld [vmem:[#allocation5 + $0x130] sm:$0xff] }
  0x1f   :  { %590 = vmatpush.bf16.msra.mxu2 %v1015_v14  ;;  %v1042_v47 = vld [vmem:[#allocation5 + $0x178] sm:$0xff]  ;;  %v1011_v48 = vld [vmem:[#allocation5 + $0x80] sm:$0xff]  ;;  %v1041_v52 = vld [vmem:[#allocation5 + $0x170] sm:$0xff] }
  0x20   :  { %604 = vmatpush.bf16.msra.mxu3 %v1023_v15  ;;  %v1019_v49 = vld [vmem:[#allocation5 + $0xc0] sm:$0xff]  ;;  %v1032_v53 = vld [vmem:[#allocation5 + $0x128] sm:$0xff]  ;;  %v78_v55 = vld [vmem:[#allocation2 + $0x40] sm:$0x3f] }
  0x21   :  { %563 = vmatpush.bf16.msra.mxu0 %v998_v20  ;;  %v116_v38 = vld.sshfl [vmem:[#allocation1] sm:$0xff pattern:$0x73625140]  ;;  %v117_v39 = vld.sshfl [vmem:[#allocation1 + $0x8] sm:$0xff pattern:$0x73625140] }
  0x22   :  { %577 = vmatpush.bf16.msra.mxu1 %v1006_v21  ;;  %v118_v40 = vld.sshfl [vmem:[#allocation1 + $0x10] sm:$0xff pattern:$0x73625140]  ;;  %v119_v41 = vld.sshfl [vmem:[#allocation1 + $0x18] sm:$0xff pattern:$0x73625140] }
  0x23   :  { %591 = vmatpush.bf16.msra.mxu2 %v1014_v22  ;;  %123 = vst [vmem:[#allocation1] ss:$4 sm:$0xff] %v77_v35  ;;  %v1043_v50 = vld [vmem:[#allocation5 + $0x180] sm:$0xff]  ;;  %v1040_v54 = vld [vmem:[#allocation5 + $0x168] sm:$0xff]  ;;  %v84_v6 = vld [vmem:[#allocation2 + $0x6a] sm:$0x3f] }
  0x24   :  { %605 = vmatpush.bf16.msra.mxu3 %v1022_v23  ;;  %124 = vst [vmem:[#allocation1 + $0x1] ss:$4 sm:$0xff] %v79_v36  ;;  %v80_v58 = vld [vmem:[#allocation2 + $0x4e] sm:$0x3f]  ;;  %v82_v3 = vld [vmem:[#allocation2 + $0x5c] sm:$0x3f] }
  0x25   :  { %564 = vmatpush.bf16.msra.mxu0 %v997_v25  ;;  %125 = vst [vmem:[#allocation1 + $0x2] ss:$4 sm:$0xff] %v81_v37  ;;  %v120_v1 = vld.sshfl [vmem:[#allocation1 + $0x20] sm:$0xff pattern:$0x73625140]  ;;  %v1031_v5 = vld [vmem:[#allocation5 + $0x120] sm:$0xff] }
  0x26   :  { %578 = vmatpush.bf16.msra.mxu1 %v1005_v26  ;;  %126 = vst [vmem:[#allocation1 + $0x3] ss:$4 sm:$0xff] %v83_v42  ;;  %v121_v2 = vld.sshfl [vmem:[#allocation1 + $0x28] sm:$0xff pattern:$0x73625140]  ;;  %v1039_v7 = vld [vmem:[#allocation5 + $0x160] sm:$0xff] }
  0x27   :  { %592 = vmatpush.bf16.msra.mxu2 %v1013_v28  ;;  %v122_v4 = vld.sshfl [vmem:[#allocation1 + $0x30] sm:$0xff pattern:$0x73625140]  ;;  %v1029_v10 = vld [vmem:[#allocation5 + $0x110] sm:$0xff]  ;;  %v1028_v14 = vld [vmem:[#allocation5 + $0x108] sm:$0xff] }
  0x28   :  { %606 = vmatpush.bf16.msra.mxu3 %v1021_v29  ;;  %127 = vst [vmem:[#allocation1 + $0x20] ss:$4 sm:$0xff] %v78_v55  ;;  %v1030_v8 = vld [vmem:[#allocation5 + $0x118] sm:$0xff]  ;;  %v1037_v11 = vld [vmem:[#allocation5 + $0x150] sm:$0xff]  ;;  %v1036_v15 = vld [vmem:[#allocation5 + $0x148] sm:$0xff] }
  0x29   :  { %565 = vmatpush.bf16.msra.mxu0 %v996_v31  ;;  %128 = vst [vmem:[#allocation1 + $0x21] ss:$4 sm:$0xff] %v80_v58  ;;  %v1038_v9 = vld [vmem:[#allocation5 + $0x158] sm:$0xff]  ;;  %v1027_v16 = vld [vmem:[#allocation5 + $0x100] sm:$0xff]  ;;  %v1049_v24 = vld [vmem:[#allocation7 + $0x28] sm:$0xff] }
  0x2a   :  { %579 = vmatpush.bf16.msra.mxu1 %v1004_v32  ;;  %129 = vst [vmem:[#allocation1 + $0x22] ss:$4 sm:$0xff] %v82_v3  ;;  %v1035_v18 = vld [vmem:[#allocation5 + $0x140] sm:$0xff]  ;;  %v1050_v23 = vld [vmem:[#allocation7 + $0x30] sm:$0xff]  ;;  %v1048_v25 = vld [vmem:[#allocation7 + $0x20] sm:$0xff] }
  0x2b   :  { %593 = vmatpush.bf16.msra.mxu2 %v1012_v33  ;;  %130 = vst [vmem:[#allocation1 + $0x23] ss:$4 sm:$0xff] %v84_v6  ;;  %v1051_v22 = vld [vmem:[#allocation7 + $0x38] sm:$0xff]  ;;  %v1046_v27 = vld [vmem:[#allocation7 + $0x10] sm:$0xff]  ;;  %v1045_v28 = vld [vmem:[#allocation7 + $0x8] sm:$0xff] }
  0x2c   :  { %607 = vmatpush.bf16.msra.mxu3 %v1020_v34  ;;  %v1047_v26 = vld [vmem:[#allocation7 + $0x18] sm:$0xff]  ;;  %v1044_v32 = vld [vmem:[#allocation7] sm:$0xff] }
  0x2d   :  { %566 = vmatpush.bf16.msra.mxu0 %v995_v43  ;;  %v133_v56 = vld.sshfl [vmem:[#allocation1 + $0x10] sm:$0xff pattern:$0x73625140]  ;;  %v131_v57 = vld.sshfl [vmem:[#allocation1] sm:$0xff pattern:$0x73625140] }
  0x2e   :  { %580 = vmatpush.bf16.msra.mxu1 %v1003_v44  ;;  %v154_v59 = vpack.c.bf16 %v133_v56, %v118_v40  ;;  %v152_v60 = vpack.c.bf16 %v131_v57, %v116_v38  ;;  %v134_v61 = vld.sshfl [vmem:[#allocation1 + $0x18] sm:$0xff pattern:$0x73625140]  ;;  %v132_v62 = vld.sshfl [vmem:[#allocation1 + $0x8] sm:$0xff pattern:$0x73625140] }
  0x2f   :  { %594 = vmatpush.bf16.msra.mxu2 %v1011_v48  ;;  %v155_v63 = vpack.c.bf16 %v134_v61, %v119_v41  ;;  %v153_v0 = vpack.c.bf16 %v132_v62, %v117_v39  ;;  %v1065_v33 = vld [vmem:[%s1236_s2] ss:$0 sm:$0xff] }
  0x30   :  { %608 = vmatpush.bf16.msra.mxu3 %v1019_v49  ;;  %567 = vmatmul.bf16.vlgmr.msra.gmra.mxu0 %v152_v60 }
  0x31   :  { %615 = vmatpush.bf16.msrb.mxu0 %v1034_v46  ;;  %581 = vmatmul.bf16.vlgmr.msra.gmra.mxu1 %v153_v0 }
  0x32   :  { %629 = vmatpush.bf16.msrb.mxu1 %v1042_v47  ;;  %595 = vmatmul.bf16.vlgmr.msra.gmra.mxu2 %v154_v59  ;;  %v137_v12 = vld.sshfl [vmem:[#allocation1 + $0x30] sm:$0xff pattern:$0x73625140]  ;;  %v135_v17 = vld.sshfl [vmem:[#allocation1 + $0x20] sm:$0xff pattern:$0x73625140] }
  0x33   :  { %650 = vmatpush.bf16.msrb.mxu2 %v1043_v50  ;;  %609 = vmatmul.bf16.vlgmr.msra.gmra.mxu3 %v155_v63  ;;  %v158_v13 = vpack.c.bf16 %v137_v12, %v122_v4  ;;  %v136_v19 = vld.sshfl [vmem:[#allocation1 + $0x28] sm:$0xff pattern:$0x73625140]  ;;  %v156_v20 = vpack.c.bf16 %v135_v17, %v120_v1  ;;  %v1066_v63 = vld [vmem:[%s1238_s4] ss:$0 sm:$0xff] }
  0x34   :  { %v157_v21 = vpack.c.bf16 %v136_v19, %v121_v2  ;;  %728 = vmatpush.bf16.msrb.mxu3 %v1051_v22 }
  0x35   :  { %616 = vmatpush.bf16.msrb.mxu0 %v1033_v51 }
  0x36   :  { %630 = vmatpush.bf16.msrb.mxu1 %v1041_v52 }
  0x38   :  { %729 = vmatpush.bf16.msrb.mxu3 %v1050_v23 }
  0x39   :  { %617 = vmatpush.bf16.msrb.mxu0 %v1032_v53 }
  0x3a   :  { %631 = vmatpush.bf16.msrb.mxu1 %v1040_v54 }
  0x3c   :  { %730 = vmatpush.bf16.msrb.mxu3 %v1049_v24 }
  0x3d   :  { %618 = vmatpush.bf16.msrb.mxu0 %v1031_v5 }
  0x3e   :  { %632 = vmatpush.bf16.msrb.mxu1 %v1039_v7 }
  0x40   :  { %731 = vmatpush.bf16.msrb.mxu3 %v1048_v25 }
  0x41   :  { %619 = vmatpush.bf16.msrb.mxu0 %v1030_v8 }
  0x42   :  { %633 = vmatpush.bf16.msrb.mxu1 %v1038_v9  ;;  %962 = vmatmul.msk.bf16.vlgmr.msrb.gmra.mxu2 %vm555_vm0, %v158_v13 }
  0x44   :  { %732 = vmatpush.bf16.msrb.mxu3 %v1047_v26 }
  0x45   :  { %620 = vmatpush.bf16.msrb.mxu0 %v1029_v10 }
  0x46   :  { %634 = vmatpush.bf16.msrb.mxu1 %v1037_v11 }
  0x48   :  { %733 = vmatpush.bf16.msrb.mxu3 %v1046_v27 }
  0x49   :  { %621 = vmatpush.bf16.msrb.mxu0 %v1028_v14 }
  0x4a   :  { %635 = vmatpush.bf16.msrb.mxu1 %v1036_v15 }
  0x4c   :  { %734 = vmatpush.bf16.msrb.mxu3 %v1045_v28 }
  0x4d   :  { %622 = vmatpush.bf16.msrb.mxu0 %v1027_v16 }
  0x4e   :  { %636 = vmatpush.bf16.msrb.mxu1 %v1035_v18 }
  0x50   :  { %623 = vmatmul.bf16.vlgmr.msrb.gmra.mxu0 %v156_v20  ;;  %735 = vmatpush.bf16.msrb.mxu3 %v1044_v32 }
  0x51   :  { %637 = vmatmul.bf16.vlgmr.msrb.gmra.mxu1 %v157_v21 }
  0xad   :  { %v568_v29 = vpop.f32.mrf.mxu0 }
  0xae   :  { %v582_v31 = vpop.f32.mrf.mxu1  ;;  %v569_v34 = vadd.f32 %v1065_v33, %v568_v29 }
  0xb0   :  { %v583_v37 = vadd.f32 %v582_v31, %v569_v34 }
  0xb5   :  { %v596_v30 = vpop.f32.mrf.mxu2  ;;  %v570_v35 = vpop.f32.mrf.mxu0 }
  0xb6   :  { %v584_v38 = vpop.f32.mrf.mxu1  ;;  %v610_v39 = vpop.f32.mrf.mxu3  ;;  %v571_v40 = vadd.f32 %v1065_v33, %v570_v35  ;;  %v597_v41 = vadd.f32 %v596_v30, %v583_v37 }
  0xb8   :  { %v585_v42 = vadd.f32 %v584_v38, %v571_v40  ;;  %v611_v44 = vadd.f32 %v610_v39, %v597_v41 }
  0xbd   :  { %v598_v36 = vpop.f32.mrf.mxu2 }
  0xbe   :  { %v599_v47 = vadd.f32 %v598_v36, %v585_v42  ;;  %v612_v49 = vpop.f32.mrf.mxu3 }
  0xc0   :  { %v613_v50 = vadd.f32 %v612_v49, %v599_v47 }
  0xc5   :  { %v652_v46 = vpop.f32.mrf.mxu2 }
  0xcd   :  { %v624_v43 = vpop.f32.mrf.mxu0  ;;  %v654_v57 = vpop.f32.mrf.mxu2 }
  0xce   :  { %v638_v45 = vpop.f32.mrf.mxu1  ;;  %v625_v48 = vadd.f32 %v624_v43, %v611_v44 }
  0xd0   :  { %v639_v51 = vadd.f32 %v638_v45, %v625_v48 }
  0xd2   :  { %v653_v55 = vadd.f32 %v652_v46, %v639_v51 }
  0xd4   :  { %v657_v59 = vmax.f32 %v653_v55, 0.0 }
  0xd5   :  { %v626_v52 = vpop.f32.mrf.mxu0 }
  0xd6   :  { %v627_v53 = vadd.f32 %v626_v52, %v613_v50  ;;  %v640_v54 = vpop.f32.mrf.mxu1 }
  0xd8   :  { %v641_v56 = vadd.f32 %v640_v54, %v627_v53 }
  0xda   :  { %v655_v58 = vadd.f32 %v654_v57, %v641_v56 }
  0xdc   :  { %v658_v60 = vmax.f32 %v655_v58, 0.0 }
  0xde   :  { %v659_v61 = vpack.c.bf16 %v658_v60, %v657_v59 }
  0xe0   :  { %736 = vmatmul.bf16.vlgmr.msrb.gmra.mxu3 %v659_v61 }
 0x163   :  { %v737_v62 = vpop.f32.mrf.mxu3 }
 0x164   :  { %v738_v1 = vadd.f32 %v1066_v63, %v737_v62 }
 0x16b   :  { %v739_v0 = vpop.f32.mrf.mxu3 }
 0x16c   :  { %v740_v2 = vadd.f32 %v1066_v63, %v739_v0 }
 0x16e   :  { %v1055_v3 = vpack.c.bf16 %v740_v2, %v738_v1 }
 0x170   :  { %1056 = vst [vmem:[#allocation8] sm:$0xff] %v1055_v3  }
 0x171   :  { %758 = dma.vmem_to_hbm [thread:$0]  %s751_s13, 128, %s753_s16, [#allocation4], %s1170_s26, %s1170_s26, %s1171_s27  }
 0x172   :  { %1167 = dma.done.wait [#allocation4], 128  }
 0x173   :  { %1168 = vsyncadd [#allocation4], 4294967168 }
 0x174   :  { %763 = vsyncpa [#allocation3], 1 }
 0x175   :  { %764 = vsyncpa [#allocation6], 1 }
 0x176   :  { %765 = vsyncpa [#allocation4], 1 }

</bundles_post_ra>
